<compile_context>
chip_gen: v5e
topology: v5e:2x2
jax: 0.10.0
libtpu: 0.0.40
codegen_flags: <defaults>
</compile_context>

<pallas_src>
import jax
import jax.numpy as jnp
from jax import lax
from jax.experimental import pallas as pl
from jax.experimental.pallas import tpu as pltpu


def _round_up(x, m):
    return ((x + m - 1) // m) * m


def mlp_kernel(x_ref, w1_ref, b1_ref, w2_ref, b2_ref, w3_ref, b3_ref, oT_ref):
    # x_ref: (TB, F) -- native (batch, features) layout straight from HBM.
    x = x_ref[...]

    # Contract feature dim of W1 (H1, F) against feature dim of x (TB, F)
    # -> (H1, TB): batch lands on lanes for the rest of the kernel, keeping
    # the MXU output, ReLU/sigmoid and the final store lane-dense.
    dn = (((1,), (1,)), ((), ()))
    h1 = lax.dot_general(w1_ref[...], x, dn,
                         preferred_element_type=jnp.float32) + b1_ref[...]
    h1 = jnp.maximum(h1, 0.0)                                   # (H1, TB)

    h2 = jnp.dot(w2_ref[...], h1,
                 preferred_element_type=jnp.float32) + b2_ref[...]
    h2 = jnp.maximum(h2, 0.0)                                   # (H2, TB)

    z = jnp.dot(w3_ref[...], h2,
                preferred_element_type=jnp.float32) + b3_ref[...]
    oT_ref[...] = jax.nn.sigmoid(z)                             # exp -> EUP slot


def mlp_forward(x, w1, b1, w2, b2, w3, b3, *, batch_tile=None):
    """x: (B, F); weights in torch layout (out, in); biases (out, 1)."""
    B, F = x.shape
    O = w3.shape[0]

    if batch_tile is None:
        # Multiple of 256 (v6e MXU width), target 2048 for large B, capped at
        # ~ceil(B/2) so n_tiles >= 2 and both v7x TensorCores are fed.
        batch_tile = max(256, min(2048, _round_up(pl.cdiv(B, 2), 256)))
    TB = batch_tile

    # Ragged last tile: no jnp.pad; Pallas masks edge-tile output stores and
    # the garbage lanes read past B never reach HBM.
    n_tiles = pl.cdiv(B, TB)

    # Constant index_maps -> weights/biases DMA'd once, VMEM-resident across
    # the whole grid. (Could add pipeline_mode=pl.Buffered(1) to drop the
    # pointless second buffer; negligible at these sizes.)
    resident = lambda a: pl.BlockSpec(a.shape, lambda i: (0, 0))

    oT = pl.pallas_call(
        mlp_kernel,
        out_shape=jax.ShapeDtypeStruct((O, B), jnp.float32),
        grid=(n_tiles,),
        in_specs=[
            pl.BlockSpec((TB, F), lambda i: (i, 0)),   # native-layout x tile, pipelined
            resident(w1), resident(b1),
            resident(w2), resident(b2),
            resident(w3), resident(b3),
        ],
        out_specs=pl.BlockSpec((O, TB), lambda i: (0, i)),      # lane-dense store
        compiler_params=pltpu.CompilerParams(
            dimension_semantics=("parallel",)),                 # shard tiles across TCs
    )(x, w1, b1, w2, b2, w3, b3)

    # (O, B) lane-dense kernel output -> (B, O) to match the torch module's
    # return layout. If the consumer can accept (O, B) directly, drop this.
    return oT.T


def init_linear(key, fan_in, fan_out):
    # Mirrors torch.nn.Linear default init: U(-1/sqrt(fan_in), 1/sqrt(fan_in)).
    # Stored in torch layout: W (out, in), b (out, 1).
    kw, kb = jax.random.split(key)
    bound = 1.0 / jnp.sqrt(jnp.float32(fan_in))
    w = jax.random.uniform(kw, (fan_out, fan_in), jnp.float32, -bound, bound)
    b = jax.random.uniform(kb, (fan_out, 1), jnp.float32, -bound, bound)
    return w, b


def reference_forward(x, w1, b1, w2, b2, w3, b3):
    h1 = jax.nn.relu(x @ w1.T + b1.T)
    h2 = jax.nn.relu(h1 @ w2.T + b2.T)
    return jax.nn.sigmoid(h2 @ w3.T + b3.T)


if __name__ == "__main__":
    n_features, n_hidden1, n_hidden2, n_output = 16, 32, 32, 8
    batch = 10  # deliberately not a multiple of the tile -> exercises ragged edge tile

    key = jax.random.PRNGKey(0)
    kx, k1, k2, k3 = jax.random.split(key, 4)

    x = jax.random.normal(kx, (batch, n_features), jnp.float32)
    w1, b1 = init_linear(k1, n_features, n_hidden1)
    w2, b2 = init_linear(k2, n_hidden1, n_hidden2)
    w3, b3 = init_linear(k3, n_hidden2, n_output)

    out = mlp_forward(x, w1, b1, w2, b2, w3, b3)
    out = jax.block_until_ready(out)

    ref = reference_forward(x, w1, b1, w2, b2, w3, b3)
    assert out.shape == (batch, n_output)
    assert jnp.allclose(out, ref, atol=1e-5, rtol=1e-5)

    print("KERNEL_OK")
</pallas_src>

<mosaic_0001>
module attributes {stable_mosaic.version = 11 : i64} {
  func.func @mlp_kernel(%arg0: i32, %arg1: memref<256x16xf32, #tpu.memory_space<vmem>>, %arg2: memref<32x16xf32, #tpu.memory_space<vmem>>, %arg3: memref<32x1xf32, #tpu.memory_space<vmem>>, %arg4: memref<32x32xf32, #tpu.memory_space<vmem>>, %arg5: memref<32x1xf32, #tpu.memory_space<vmem>>, %arg6: memref<8x32xf32, #tpu.memory_space<vmem>>, %arg7: memref<8x1xf32, #tpu.memory_space<vmem>>, %arg8: memref<8x256xf32, #tpu.memory_space<vmem>>) attributes {dimension_semantics = [#tpu.dimension_semantics<parallel>], iteration_bounds = array<i64: 1>, scalar_prefetch = 0 : i64, scratch_operands = 0 : i64, tpu.core_type = #tpu.core_type<tc>, window_params = [{transform_indices = @transform_0, window_bounds = array<i64: 256, 16>}, {pipeline_mode = #tpu.pipeline_mode<synchronous>, transform_indices = @transform_1, window_bounds = array<i64: 32, 16>}, {pipeline_mode = #tpu.pipeline_mode<synchronous>, transform_indices = @transform_2, window_bounds = array<i64: 32, 1>}, {pipeline_mode = #tpu.pipeline_mode<synchronous>, transform_indices = @transform_3, window_bounds = array<i64: 32, 32>}, {pipeline_mode = #tpu.pipeline_mode<synchronous>, transform_indices = @transform_4, window_bounds = array<i64: 32, 1>}, {pipeline_mode = #tpu.pipeline_mode<synchronous>, transform_indices = @transform_5, window_bounds = array<i64: 8, 32>}, {pipeline_mode = #tpu.pipeline_mode<synchronous>, transform_indices = @transform_6, window_bounds = array<i64: 8, 1>}, {transform_indices = @transform_7, window_bounds = array<i64: 8, 256>}]} {
    %c0 = arith.constant 0 : index
    %c0_0 = arith.constant 0 : index
    %0 = vector.load %arg1[%c0, %c0_0] : memref<256x16xf32, #tpu.memory_space<vmem>>, vector<256x16xf32>
    %c0_1 = arith.constant 0 : index
    %c0_2 = arith.constant 0 : index
    %1 = vector.load %arg2[%c0_1, %c0_2] : memref<32x16xf32, #tpu.memory_space<vmem>>, vector<32x16xf32>
    %cst = arith.constant dense<0.000000e+00> : vector<32x256xf32>
    %2 = tpu.matmul %1, %0, %cst {dimension_numbers = #tpu.dot_dimension_numbers<[1], [1], [0], [0], [0, 0, 1, 0], [], []>} : vector<32x16xf32>, vector<256x16xf32>, vector<32x256xf32> -> vector<32x256xf32>
    %c0_3 = arith.constant 0 : index
    %c0_4 = arith.constant 0 : index
    %3 = vector.load %arg3[%c0_3, %c0_4] : memref<32x1xf32, #tpu.memory_space<vmem>>, vector<32x1xf32>
    %4 = vector.broadcast %3 : vector<32x1xf32> to vector<32x256xf32>
    %5 = arith.addf %2, %4 : vector<32x256xf32>
    %cst_5 = arith.constant 0.000000e+00 : f32
    %6 = vector.broadcast %cst_5 : f32 to vector<32x256xf32>
    %7 = arith.maximumf %5, %6 : vector<32x256xf32>
    %c0_6 = arith.constant 0 : index
    %c0_7 = arith.constant 0 : index
    %8 = vector.load %arg4[%c0_6, %c0_7] : memref<32x32xf32, #tpu.memory_space<vmem>>, vector<32x32xf32>
    %cst_8 = arith.constant dense<0.000000e+00> : vector<32x256xf32>
    %9 = tpu.matmul %8, %7, %cst_8 {dimension_numbers = #tpu.dot_dimension_numbers<[1], [0], [0], [1], [0, 0, 1, 1], [], []>} : vector<32x32xf32>, vector<32x256xf32>, vector<32x256xf32> -> vector<32x256xf32>
    %c0_9 = arith.constant 0 : index
    %c0_10 = arith.constant 0 : index
    %10 = vector.load %arg5[%c0_9, %c0_10] : memref<32x1xf32, #tpu.memory_space<vmem>>, vector<32x1xf32>
    %11 = vector.broadcast %10 : vector<32x1xf32> to vector<32x256xf32>
    %12 = arith.addf %9, %11 : vector<32x256xf32>
    %cst_11 = arith.constant 0.000000e+00 : f32
    %13 = vector.broadcast %cst_11 : f32 to vector<32x256xf32>
    %14 = arith.maximumf %12, %13 : vector<32x256xf32>
    %c0_12 = arith.constant 0 : index
    %c0_13 = arith.constant 0 : index
    %15 = vector.load %arg6[%c0_12, %c0_13] : memref<8x32xf32, #tpu.memory_space<vmem>>, vector<8x32xf32>
    %cst_14 = arith.constant dense<0.000000e+00> : vector<8x256xf32>
    %16 = tpu.matmul %15, %14, %cst_14 {dimension_numbers = #tpu.dot_dimension_numbers<[1], [0], [0], [1], [0, 0, 1, 1], [], []>} : vector<8x32xf32>, vector<32x256xf32>, vector<8x256xf32> -> vector<8x256xf32>
    %c0_15 = arith.constant 0 : index
    %c0_16 = arith.constant 0 : index
    %17 = vector.load %arg7[%c0_15, %c0_16] : memref<8x1xf32, #tpu.memory_space<vmem>>, vector<8x1xf32>
    %18 = vector.broadcast %17 : vector<8x1xf32> to vector<8x256xf32>
    %19 = arith.addf %16, %18 : vector<8x256xf32>
    %20 = arith.negf %19 : vector<8x256xf32>
    %21 = math.exp %20 : vector<8x256xf32>
    %cst_17 = arith.constant 1.000000e+00 : f32
    %22 = vector.broadcast %cst_17 : f32 to vector<8x256xf32>
    %23 = arith.addf %22, %21 : vector<8x256xf32>
    %24 = arith.divf %22, %23 : vector<8x256xf32>
    %c0_18 = arith.constant 0 : index
    %c0_19 = arith.constant 0 : index
    %25 = vector.load %arg8[%c0_18, %c0_19] : memref<8x256xf32, #tpu.memory_space<vmem>>, vector<8x256xf32>
    tpu.vector_store %arg8[%c0_18, %c0_19], %24 {strides = array<i32>} : memref<8x256xf32, #tpu.memory_space<vmem>>, vector<8x256xf32>,
    return
  }
  func.func @transform_0(%arg0: i32) -> (i32, i32) {
    %c0_i32 = arith.constant 0 : i32
    %c0_i32_0 = arith.constant 0 : i32
    return %arg0, %c0_i32 : i32, i32
  }
  func.func @transform_1(%arg0: i32) -> (i32, i32) {
    %c0_i32 = arith.constant 0 : i32
    %c0_i32_0 = arith.constant 0 : i32
    %c0_i32_1 = arith.constant 0 : i32
    return %c0_i32, %c0_i32_0 : i32, i32
  }
  func.func @transform_2(%arg0: i32) -> (i32, i32) {
    %c0_i32 = arith.constant 0 : i32
    %c0_i32_0 = arith.constant 0 : i32
    %c0_i32_1 = arith.constant 0 : i32
    return %c0_i32, %c0_i32_0 : i32, i32
  }
  func.func @transform_3(%arg0: i32) -> (i32, i32) {
    %c0_i32 = arith.constant 0 : i32
    %c0_i32_0 = arith.constant 0 : i32
    %c0_i32_1 = arith.constant 0 : i32
    return %c0_i32, %c0_i32_0 : i32, i32
  }
  func.func @transform_4(%arg0: i32) -> (i32, i32) {
    %c0_i32 = arith.constant 0 : i32
    %c0_i32_0 = arith.constant 0 : i32
    %c0_i32_1 = arith.constant 0 : i32
    return %c0_i32, %c0_i32_0 : i32, i32
  }
  func.func @transform_5(%arg0: i32) -> (i32, i32) {
    %c0_i32 = arith.constant 0 : i32
    %c0_i32_0 = arith.constant 0 : i32
    %c0_i32_1 = arith.constant 0 : i32
    return %c0_i32, %c0_i32_0 : i32, i32
  }
  func.func @transform_6(%arg0: i32) -> (i32, i32) {
    %c0_i32 = arith.constant 0 : i32
    %c0_i32_0 = arith.constant 0 : i32
    %c0_i32_1 = arith.constant 0 : i32
    return %c0_i32, %c0_i32_0 : i32, i32
  }
  func.func @transform_7(%arg0: i32) -> (i32, i32) {
    %c0_i32 = arith.constant 0 : i32
    %c0_i32_0 = arith.constant 0 : i32
    return %c0_i32, %arg0 : i32, i32
  }
}

</mosaic_0001>

<bundles_post_ra>
// kernel: tpu_custom_call.1
= control target key start
LH: loop header
LB: loop body
LE: loop exit
PB: predicated region body
PF: predicated region fallthrough
CT: control target
= control target key end

     0   :  { %12 = vsyncpa [#allocation3], 0  ;;  %vm87_vm0 = vcmask 130048   ;;  %v566_v21 = vmov 0   ;;  %vm290_vm1 = vcmask 261120   ;;  %s811_s0 = inlined_call_operand.vmem [shape: f32[10,16], index: 0, kind: input, shape index: {}]   ;;  %s812_s1 = inlined_call_operand.vmem [shape: f32[32,16], index: 1, kind: input, shape index: {}]   ;;  %s813_s2 = inlined_call_operand.vmem [shape: f32[32,1], index: 2, kind: input, shape index: {}]   ;;  %s814_s3 = inlined_call_operand.vmem [shape: f32[32,32], index: 3, kind: input, shape index: {}]   ;;  %s815_s4 = inlined_call_operand.vmem [shape: f32[32,1], index: 4, kind: input, shape index: {}]   ;;  %s816_s5 = inlined_call_operand.vmem [shape: f32[8,32], index: 5, kind: input, shape index: {}]   ;;  %s817_s6 = inlined_call_operand.vmem [shape: f32[8,1], index: 6, kind: input, shape index: {}]   ;;  %s818_s7 = inlined_call_operand.hbm [shape: f32[8,10], index: 7, kind: output, shape index: {}]  }
   0x1   :  { %v42_v0 = vld [vmem:[%s811_s0 + $0x78] sm:$0xff]  ;;  %v41_v2 = vld [vmem:[%s811_s0 + $0x70] sm:$0xff]  ;;  %v40_v4 = vld [vmem:[%s811_s0 + $0x68] sm:$0xff]  ;;  %530 = vset.pattern.permute.xlu1 %v566_v21  ;;  %529 = vset.pattern.permute.xlu0 %v566_v21 }
   0x2   :  { %v58_v1 = vld [vmem:[%s811_s0 + $0xf8] sm:$0xff]  ;;  %475 = vmatpush.xpose.msk.msra.mxu0 %vm87_vm0, %v42_v0  ;;  %v57_v3 = vld [vmem:[%s811_s0 + $0xf0] sm:$0xff]  ;;  %v56_v5 = vld [vmem:[%s811_s0 + $0xe8] sm:$0xff]  ;;  %531 = vset.pattern.permute.xlu2 %v566_v21 }
   0x3   :  { %495 = vmatpush.xpose.msk.msra.mxu1 %vm87_vm0, %v58_v1  ;;  %v39_v6 = vld [vmem:[%s811_s0 + $0x60] sm:$0xff]  ;;  %v38_v8 = vld [vmem:[%s811_s0 + $0x58] sm:$0xff]  ;;  %v37_v10 = vld [vmem:[%s811_s0 + $0x50] sm:$0xff] }
   0x4   :  { %v55_v7 = vld [vmem:[%s811_s0 + $0xe0] sm:$0xff]  ;;  %v54_v9 = vld [vmem:[%s811_s0 + $0xd8] sm:$0xff]  ;;  %v53_v11 = vld [vmem:[%s811_s0 + $0xd0] sm:$0xff] }
   0x5   :  { %v36_v12 = vld [vmem:[%s811_s0 + $0x48] sm:$0xff]  ;;  %v35_v14 = vld [vmem:[%s811_s0 + $0x40] sm:$0xff]  ;;  %v34_v16 = vld [vmem:[%s811_s0 + $0x38] sm:$0xff] }
   0x6   :  { %476 = vmatpush.xpose.msk.msra.mxu0 %vm87_vm0, %v41_v2  ;;  %v52_v13 = vld [vmem:[%s811_s0 + $0xc8] sm:$0xff]  ;;  %v51_v15 = vld [vmem:[%s811_s0 + $0xc0] sm:$0xff]  ;;  %v50_v17 = vld [vmem:[%s811_s0 + $0xb8] sm:$0xff] }
   0x7   :  { %496 = vmatpush.xpose.msk.msra.mxu1 %vm87_vm0, %v57_v3  ;;  %v64_v18 = vld [vmem:[%s813_s2 + $0x8] sm:$0xff]  ;;  %v33_v19 = vld [vmem:[%s811_s0 + $0x30] sm:$0xff]  ;;  %v63_v24 = vld [vmem:[%s813_s2] sm:$0xff] }
   0x8   :  { %v49_v20 = vld [vmem:[%s811_s0 + $0xb0] sm:$0xff]  ;;  %74 = vperm.xlu1 %530, %v64_v18   ;;  %v32_v22 = vld [vmem:[%s811_s0 + $0x28] sm:$0xff]  ;;  %v66_v25 = vld [vmem:[%s813_s2 + $0x18] sm:$0xff] }
   0x9   :  { %v48_v23 = vld [vmem:[%s811_s0 + $0xa8] sm:$0xff]  ;;  %v31_v26 = vld [vmem:[%s811_s0 + $0x20] sm:$0xff]  ;;  %84 = vperm.xlu0 %529, %v66_v25   ;;  %v30_v28 = vld [vmem:[%s811_s0 + $0x18] sm:$0xff] }
   0xa   :  { %477 = vmatpush.xpose.msk.msra.mxu0 %vm87_vm0, %v40_v4  ;;  %v47_v27 = vld [vmem:[%s811_s0 + $0xa0] sm:$0xff]  ;;  %v46_v29 = vld [vmem:[%s811_s0 + $0x98] sm:$0xff]  ;;  %v65_v30 = vld [vmem:[%s813_s2 + $0x10] sm:$0xff] }
   0xb   :  { %497 = vmatpush.xpose.msk.msra.mxu1 %vm87_vm0, %v56_v5  ;;  %v29_v31 = vld [vmem:[%s811_s0 + $0x10] sm:$0xff]  ;;  %v28_v33 = vld [vmem:[%s811_s0 + $0x8] sm:$0xff]  ;;  %v266_v36 = vld [vmem:[%s815_s4] sm:$0xff] }
   0xc   :  { %v45_v32 = vld [vmem:[%s811_s0 + $0x90] sm:$0xff]  ;;  %v44_v34 = vld [vmem:[%s811_s0 + $0x88] sm:$0xff]  ;;  %v27_v37 = vld [vmem:[%s811_s0] sm:$0xff] }
   0xd   :  { %v267_v35 = vld [vmem:[%s815_s4 + $0x8] sm:$0xff]  ;;  %v43_v38 = vld [vmem:[%s811_s0 + $0x80] sm:$0xff]  ;;  %v61_v41 = vld [vmem:[%s812_s1 + $0x10] sm:$0xff] }
   0xe   :  { %478 = vmatpush.xpose.msk.msra.mxu0 %vm87_vm0, %v39_v6  ;;  %v59_v39 = vld [vmem:[%s812_s1] sm:$0xff]  ;;  %v60_v40 = vld [vmem:[%s812_s1 + $0x8] sm:$0xff]  ;;  %v62_v42 = vld [vmem:[%s812_s1 + $0x18] sm:$0xff] }
   0xf   :  { %498 = vmatpush.xpose.msk.msra.mxu1 %vm87_vm0, %v55_v7  ;;  %v269_v63 = vld [vmem:[%s815_s4 + $0x18] sm:$0xff] }
  0x10   :  { %69 = vperm.xlu1 %530, %v63_v24   ;;  %287 = vperm.xlu2 %531, %v269_v63  }
  0x11   :  { %79 = vperm.xlu0 %529, %v65_v30  }
  0x12   :  { %479 = vmatpush.xpose.msk.msra.mxu0 %vm87_vm0, %v38_v8  ;;  %v262_v8 = vld [vmem:[%s814_s3] sm:$0xff] }
  0x13   :  { %499 = vmatpush.xpose.msk.msra.mxu1 %vm87_vm0, %v54_v9  ;;  %v268_v9 = vld [vmem:[%s815_s4 + $0x10] sm:$0xff] }
  0x16   :  { %480 = vmatpush.xpose.msk.msra.mxu0 %vm87_vm0, %v37_v10  ;;  %v263_v10 = vld [vmem:[%s814_s3 + $0x8] sm:$0xff] }
  0x17   :  { %500 = vmatpush.xpose.msk.msra.mxu1 %vm87_vm0, %v53_v11  ;;  %v370_v11 = vld [vmem:[%s817_s6] sm:$0xff] }
  0x18   :  { %272 = vperm.xlu1 %530, %v266_v36   ;;  %282 = vperm.xlu2 %531, %v268_v9  }
  0x19   :  { %277 = vperm.xlu0 %529, %v267_v35  }
  0x1a   :  { %481 = vmatpush.xpose.msk.msra.mxu0 %vm87_vm0, %v36_v12  ;;  %v264_v12 = vld [vmem:[%s814_s3 + $0x10] sm:$0xff] }
  0x1b   :  { %501 = vmatpush.xpose.msk.msra.mxu1 %vm87_vm0, %v52_v13  ;;  %v265_v13 = vld [vmem:[%s814_s3 + $0x18] sm:$0xff] }
  0x1e   :  { %482 = vmatpush.xpose.msk.msra.mxu0 %vm87_vm0, %v35_v14 }
  0x1f   :  { %502 = vmatpush.xpose.msk.msra.mxu1 %vm87_vm0, %v51_v15 }
  0x20   :  { %373 = vperm.xlu2 %531, %v370_v11  }
  0x22   :  { %483 = vmatpush.xpose.msk.msra.mxu0 %vm87_vm0, %v34_v16 }
  0x23   :  { %503 = vmatpush.xpose.msk.msra.mxu1 %vm87_vm0, %v50_v17 }
  0x26   :  { %484 = vmatpush.xpose.msk.msra.mxu0 %vm87_vm0, %v33_v19 }
  0x27   :  { %504 = vmatpush.xpose.msk.msra.mxu1 %vm87_vm0, %v49_v20 }
  0x2a   :  { %485 = vmatpush.xpose.msk.msra.mxu0 %vm87_vm0, %v32_v22 }
  0x2b   :  { %505 = vmatpush.xpose.msk.msra.mxu1 %vm87_vm0, %v48_v23 }
  0x2e   :  { %486 = vmatpush.xpose.msk.msra.mxu0 %vm87_vm0, %v31_v26 }
  0x2f   :  { %506 = vmatpush.xpose.msk.msra.mxu1 %vm87_vm0, %v47_v27 }
  0x32   :  { %487 = vmatpush.xpose.msk.msra.mxu0 %vm87_vm0, %v30_v28 }
  0x33   :  { %507 = vmatpush.xpose.msk.msra.mxu1 %vm87_vm0, %v46_v29 }
  0x36   :  { %488 = vmatpush.xpose.msk.msra.mxu0 %vm87_vm0, %v29_v31 }
  0x37   :  { %508 = vmatpush.xpose.msk.msra.mxu1 %vm87_vm0, %v45_v32 }
  0x3a   :  { %489 = vmatpush.xpose.msk.msra.mxu0 %vm87_vm0, %v28_v33 }
  0x3b   :  { %509 = vmatpush.xpose.msk.msra.mxu1 %vm87_vm0, %v44_v34 }
  0x3e   :  { %490 = vmatpush.xpose.msk.msra.mxu0 %vm87_vm0, %v27_v37 }
  0x3f   :  { %510 = vmatpush.xpose.msk.msra.mxu1 %vm87_vm0, %v43_v38 }
  0x41   :  { %491 = vmatmul.msk.f32.vlgmr.msra.gmra.mxu0 %vm87_vm0, %v59_v39 }
  0x42   :  { %511 = vmatmul.msk.f32.vlgmr.msra.gmra.mxu1 %vm87_vm0, %v59_v39 }
  0x49   :  { %492 = vmatmul.msk.f32.gmra.mxu0 %vm87_vm0, %v60_v40 }
  0x4a   :  { %512 = vmatmul.msk.f32.gmra.mxu1 %vm87_vm0, %v60_v40 }
  0x51   :  { %493 = vmatmul.msk.f32.gmra.mxu0 %vm87_vm0, %v61_v41 }
  0x52   :  { %513 = vmatmul.msk.f32.gmra.mxu1 %vm87_vm0, %v61_v41 }
  0x59   :  { %494 = vmatmul.msk.f32.gmra.mxu0 %vm87_vm0, %v62_v42 }
  0x5a   :  { %514 = vmatmul.msk.f32.gmra.mxu1 %vm87_vm0, %v62_v42  ;;  %v369_v42 = vld [vmem:[%s816_s5] sm:$0xff] }
  0x6a   :  { %v288_v18 = vpop.permute.xlu2 %287 }
  0x72   :  { %v283_v21 = vpop.permute.xlu2 %282 }
  0x7a   :  { %v75_v48 = vpop.permute.xlu1 %74 }
  0x7b   :  { %v85_v47 = vpop.permute.xlu0 %84 }
  0x82   :  { %v70_v58 = vpop.permute.xlu1 %69 }
  0x83   :  { %v80_v51 = vpop.permute.xlu0 %79 }
  0x8a   :  { %v273_v33 = vpop.permute.xlu1 %272 }
  0x8b   :  { %v278_v28 = vpop.permute.xlu0 %277 }
  0xbe   :  { %v213_v43 = vpop.f32.mrf.mxu0 }
  0xbf   :  { %v242_v44 = vpop.f32.mrf.mxu1  ;;  %v214_v0 = vadd.f32 %v213_v43, %v70_v58  ;;  %v374_v43 = vpop.permute.xlu2 %373 }
  0xc0   :  { %v243_v1 = vadd.f32 %v242_v44, %v70_v58 }
  0xc1   :  { %v254_v6 = vmax.f32 %v214_v0, 0.0 }
  0xc2   :  { %v255_v7 = vmax.f32 %v243_v1, 0.0 }
  0xc6   :  { %v216_v45 = vpop.f32.mrf.mxu0 }
  0xc7   :  { %v245_v46 = vpop.f32.mrf.mxu1  ;;  %v217_v59 = vadd.f32 %v216_v45, %v75_v48 }
  0xc8   :  { %v246_v60 = vadd.f32 %v245_v46, %v75_v48 }
  0xc9   :  { %v256_v4 = vmax.f32 %v217_v59, 0.0 }
  0xca   :  { %v257_v5 = vmax.f32 %v246_v60, 0.0 }
  0xce   :  { %v219_v49 = vpop.f32.mrf.mxu0 }
  0xcf   :  { %v248_v50 = vpop.f32.mrf.mxu1  ;;  %v220_v54 = vadd.f32 %v219_v49, %v80_v51 }
  0xd0   :  { %v249_v55 = vadd.f32 %v248_v50, %v80_v51 }
  0xd1   :  { %v258_v2 = vmax.f32 %v220_v54, 0.0 }
  0xd2   :  { %v259_v3 = vmax.f32 %v249_v55, 0.0 }
  0xd6   :  { %v222_v52 = vpop.f32.mrf.mxu0 }
  0xd7   :  { %v251_v53 = vpop.f32.mrf.mxu1  ;;  %v223_v56 = vadd.f32 %v222_v52, %v85_v47 }
  0xd8   :  { %v252_v57 = vadd.f32 %v251_v53, %v85_v47 }
  0xd9   :  { %v260_v61 = vmax.f32 %v223_v56, 0.0 }
  0xda   :  { %v261_v62 = vmax.f32 %v252_v57, 0.0 }
  0xdb   :  { %315 = vmatpush.msra.mxu2 %v260_v61 }
  0xdc   :  { %344 = vmatpush.msra.mxu3 %v261_v62 }
  0xdd   :  { %316 = vmatpush.msra.mxu2 %v258_v2 }
  0xde   :  { %345 = vmatpush.msra.mxu3 %v259_v3 }
  0xdf   :  { %317 = vmatpush.msra.mxu2 %v256_v4 }
  0xe0   :  { %346 = vmatpush.msra.mxu3 %v257_v5 }
  0xe1   :  { %318 = vmatpush.msra.mxu2 %v254_v6 }
  0xe2   :  { %347 = vmatpush.msra.mxu3 %v255_v7  ;;  %515 = vmatmul.msk.f32.vlgmr.msra.gmra.mxu2 %vm290_vm1, %v262_v8 }
  0xe3   :  { %519 = vmatmul.msk.f32.vlgmr.msra.gmra.mxu3 %vm290_vm1, %v262_v8 }
  0xea   :  { %516 = vmatmul.msk.f32.gmra.mxu2 %vm290_vm1, %v263_v10 }
  0xeb   :  { %520 = vmatmul.msk.f32.gmra.mxu3 %vm290_vm1, %v263_v10 }
  0xf2   :  { %517 = vmatmul.msk.f32.gmra.mxu2 %vm290_vm1, %v264_v12 }
  0xf3   :  { %521 = vmatmul.msk.f32.gmra.mxu3 %vm290_vm1, %v264_v12 }
  0xfa   :  { %518 = vmatmul.msk.f32.gmra.mxu2 %vm290_vm1, %v265_v13 }
  0xfb   :  { %522 = vmatmul.msk.f32.gmra.mxu3 %vm290_vm1, %v265_v13 }
 0x165   :  { %v320_v14 = vpop.f32.mrf.mxu2 }
 0x166   :  { %v349_v15 = vpop.f32.mrf.mxu3  ;;  %v321_v34 = vadd.f32 %v320_v14, %v273_v33 }
 0x167   :  { %v350_v35 = vadd.f32 %v349_v15, %v273_v33 }
 0x168   :  { %v361_v40 = vmax.f32 %v321_v34, 0.0 }
 0x169   :  { %v362_v41 = vmax.f32 %v350_v35, 0.0 }
 0x16d   :  { %v323_v16 = vpop.f32.mrf.mxu2 }
 0x16e   :  { %v352_v17 = vpop.f32.mrf.mxu3  ;;  %v324_v29 = vadd.f32 %v323_v16, %v278_v28 }
 0x16f   :  { %v353_v30 = vadd.f32 %v352_v17, %v278_v28 }
 0x170   :  { %v363_v38 = vmax.f32 %v324_v29, 0.0 }
 0x171   :  { %v364_v39 = vmax.f32 %v353_v30, 0.0 }
 0x175   :  { %v326_v19 = vpop.f32.mrf.mxu2 }
 0x176   :  { %v355_v20 = vpop.f32.mrf.mxu3  ;;  %v327_v24 = vadd.f32 %v326_v19, %v283_v21 }
 0x177   :  { %v356_v25 = vadd.f32 %v355_v20, %v283_v21 }
 0x178   :  { %v365_v36 = vmax.f32 %v327_v24, 0.0 }
 0x179   :  { %v366_v37 = vmax.f32 %v356_v25, 0.0 }
 0x17d   :  { %v329_v22 = vpop.f32.mrf.mxu2 }
 0x17e   :  { %v358_v23 = vpop.f32.mrf.mxu3  ;;  %v330_v26 = vadd.f32 %v329_v22, %v288_v18 }
 0x17f   :  { %v359_v27 = vadd.f32 %v358_v23, %v288_v18 }
 0x180   :  { %v367_v31 = vmax.f32 %v330_v26, 0.0 }
 0x181   :  { %v368_v32 = vmax.f32 %v359_v27, 0.0 }
 0x182   :  { %391 = vmatpush.msrb.mxu2 %v367_v31 }
 0x183   :  { %411 = vmatpush.msrb.mxu3 %v368_v32 }
 0x184   :  { %392 = vmatpush.msrb.mxu2 %v365_v36 }
 0x185   :  { %412 = vmatpush.msrb.mxu3 %v366_v37 }
 0x186   :  { %393 = vmatpush.msrb.mxu2 %v363_v38 }
 0x187   :  { %413 = vmatpush.msrb.mxu3 %v364_v39 }
 0x188   :  { %394 = vmatpush.msrb.mxu2 %v361_v40 }
 0x189   :  { %414 = vmatpush.msrb.mxu3 %v362_v41  ;;  %523 = vmatmul.msk.f32.vlgmr.msrb.gmra.mxu2 %vm290_vm1, %v369_v42 }
 0x18a   :  { %524 = vmatmul.msk.f32.vlgmr.msrb.gmra.mxu3 %vm290_vm1, %v369_v42 }
 0x20c   :  { %v396_v44 = vpop.f32.mrf.mxu2 }
 0x20d   :  { %v416_v45 = vpop.f32.mrf.mxu3  ;;  %v397_v46 = vadd.f32 %v396_v44, %v374_v43 }
 0x20e   :  { %v417_v47 = vadd.f32 %v416_v45, %v374_v43 }
 0x20f   :  { %v525_v48 = vmul.f32 -1.442695, %v397_v46 }
 0x210   :  { %v526_v49 = vmul.f32 -1.442695, %v417_v47 }
 0x211   :  { %532 = vpow2.f32 %v525_v48 }
 0x212   :  { %534 = vpow2.f32 %v526_v49 }
 0x217   :  { %v533_v50 = vpop.eup %532 }
 0x218   :  { %v535_v51 = vpop.eup %534  ;;  %v425_v52 = vadd.f32 1.0, %v533_v50 }
 0x219   :  { %v426_v53 = vadd.f32 1.0, %v535_v51 }
 0x21a   :  { %536 = vrcp.f32 %v425_v52  ;;  %v438_v59 = vand.u32 2147483648, %v425_v52  ;;  %v436_v62 = vand.u32 2147483647, %v425_v52  ;;  %vm432_vm4 = vweird.f32 %v425_v52 }
 0x21b   :  { %538 = vrcp.f32 %v426_v53  ;;  %v453_v63 = vand.u32 2147483648, %v426_v53  ;;  %v451_v1 = vand.u32 2147483647, %v426_v53  ;;  %vm447_vm6 = vweird.f32 %v426_v53 }
 0x21c   :  { %v439_v3 = vor.u32 1.1754944e-38, %v438_v59  ;;  %vm437_vm7 = vcmp.eq.f32.partialorder %v436_v62, 8.507059e+37 }
 0x21d   :  { %v454_v6 = vor.u32 1.1754944e-38, %v453_v63  ;;  %vm452_vm9 = vcmp.eq.f32.partialorder %v451_v1, 8.507059e+37 }
 0x220   :  { %v537_v54 = vpop.eup %536 }
 0x221   :  { %v539_v55 = vpop.eup %538  ;;  %v428_v56 = vmul.f32 %v537_v54, %v425_v52  ;;  %vm433_vm2 = vweird.f32 %v537_v54 }
 0x222   :  { %v443_v57 = vmul.f32 %v539_v55, %v426_v53  ;;  %vm448_vm3 = vweird.f32 %v539_v55  ;;  %vm434_vm5 = vmor %vm432_vm4, %vm433_vm2 }
 0x223   :  { %v429_v58 = vsub.f32 1.0, %v428_v56  ;;  %vm449_vm8 = vmor %vm447_vm6, %vm448_vm3 }
 0x224   :  { %v444_v60 = vsub.f32 1.0, %v443_v57 }
 0x225   :  { %v430_v61 = vmul.f32 %v537_v54, %v429_v58 }
 0x226   :  { %v445_v0 = vmul.f32 %v539_v55, %v444_v60 }
 0x227   :  { %v431_v2 = vadd.f32 %v537_v54, %v430_v61 }
 0x228   :  { %v446_v4 = vadd.f32 %v539_v55, %v445_v0 }
 0x229   :  { %v435_v5 = vsel %vm434_vm5, %v537_v54, %v431_v2 }
 0x22a   :  { %v440_v7 = vsel %vm437_vm7, %v439_v3, %v435_v5  ;;  %v450_v8 = vsel %vm449_vm8, %v539_v55, %v446_v4 }
 0x22b   :  { %457 = vst [vmem:[#allocation2] sm:$0xff] %v440_v7  ;;  %v455_v9 = vsel %vm452_vm9, %v454_v6, %v450_v8 }
 0x22c   :  { %458 = vst [vmem:[#allocation2 + $0x8] sm:$0xff] %v455_v9 }
 0x22d   :  { %462 = vsyncadd [#allocation3], 128  ;;  %s466_s26 = sshll.u32 %s818_s7, 4  ;;  %s567_s27 = smov [#allocation2]   ;;  %s467_s26 = int_to_ptr.hbm [resolvable:$true] %s466_s26 }
 0x22e   :  { %s464_s28 = sshll.u32 %s567_s27, 4  ;;  %s465_s28 = int_to_ptr.vmem [resolvable:$true] %s464_s28 }
 0x22f   :  { %469 = dma.vmem_to_hbm [thread:$0]  %s465_s28, 128, %s467_s26, [#allocation3]  }
 0x230   :  { %564 = dma.done.wait [#allocation3], 256  }
 0x231   :  { %565 = vsyncadd [#allocation3], 4294967040 }
 0x232   :  { %474 = vsyncpa [#allocation3], 1 }

</bundles_post_ra>
